<compile_context>
chip_gen: v7x
topology: tpu7x:2x2x1
jax: 0.10.0
libtpu: 0.0.40
codegen_flags: <defaults>
</compile_context>

<pallas_src>
import functools

import jax
import jax.numpy as jnp
from jax.experimental import pallas as pl
from jax.experimental.pallas import tpu as pltpu


def _round_up(x, m):
    return (x + m - 1) // m * m


def _gather_rows(idx_block, table):
    """Gather rows of the VMEM-resident table via a one-hot MXU matmul.

    idx_block: (TM, 1) int32 token ids, table: (V, V) f32 -> (TM, V) f32.
    """
    tm = idx_block.shape[0]
    v = table.shape[0]
    col = jax.lax.broadcasted_iota(jnp.int32, (tm, v), 1)
    one_hot = (col == idx_block).astype(jnp.float32)            # (TM, V)
    return jnp.dot(one_hot, table,
                   preferred_element_type=jnp.float32,
                   precision=jax.lax.Precision.HIGHEST)          # (TM, V)


def _loss_kernel(n_rows, idx_ref, tgt_ref, table_ref, logits_ref, loss_ref):
    # idx_ref, tgt_ref : (TM, 1) int32 (VMEM)
    # table_ref        : (V, V) f32, resident in VMEM (constant index_map)
    # logits_ref       : (TM, V) f32 -- row-block of the logits output
    # loss_ref         : (TM, 1) f32 -- per-row CE (0 for padded rows)
    tm, v = logits_ref.shape

    logits = _gather_rows(idx_ref[...], table_ref[...])          # (TM, V)
    logits_ref[...] = logits

    # Cross entropy per row: logsumexp(logits) - logits[target].
    m = jnp.max(logits, axis=-1, keepdims=True)                  # (TM, 1)
    lse = jnp.log(jnp.sum(jnp.exp(logits - m), axis=-1, keepdims=True)) + m

    col = jax.lax.broadcasted_iota(jnp.int32, (tm, v), 1)
    tgt_logit = jnp.sum(jnp.where(col == tgt_ref[...], logits, 0.0),
                        axis=-1, keepdims=True)                  # (TM, 1)

    # Mask out rows added by padding N up to a multiple of TM.
    row = (pl.program_id(0) * tm
           + jax.lax.broadcasted_iota(jnp.int32, (tm, 1), 0))
    valid = (row < n_rows).astype(jnp.float32)
    loss_ref[...] = (lse - tgt_logit) * valid


def _logits_kernel(idx_ref, table_ref, logits_ref):
    """Inference path: pure block gather, no cross entropy."""
    logits_ref[...] = _gather_rows(idx_ref[...], table_ref[...])


def bigram_forward(idx, embedding_table, targets=None, block_rows=512):
    """Pallas implementation of BigramLanguageModel.forward.

    idx:              (B, T) int32 token ids
    embedding_table:  (V, V) float32
    targets:          (B, T) int32 or None

    Returns (logits, loss):
      - targets is None: logits (B, T, V), loss None
      - else:            logits (B*T, V),  loss scalar f32 (matches PyTorch view)
    """
    B, T = idx.shape
    V = embedding_table.shape[0]
    N = B * T

    TM = min(block_rows, _round_up(N, 8))          # rows per grid step
    N_pad = _round_up(N, TM)
    n_blocks = N_pad // TM

    idx_flat = idx.reshape(N).astype(jnp.int32)
    if N_pad != N:
        idx_flat = jnp.pad(idx_flat, (0, N_pad - N))
    idx_col = idx_flat.reshape(N_pad, 1)
    table = embedding_table.astype(jnp.float32)

    table_spec = pl.BlockSpec((V, V), lambda i: (0, 0))      # resident, 1 DMA
    tok_spec = pl.BlockSpec((TM, 1), lambda i: (i, 0))
    logits_spec = pl.BlockSpec((TM, V), lambda i: (i, 0))

    if targets is None:
        logits_pad = pl.pallas_call(
            _logits_kernel,
            out_shape=jax.ShapeDtypeStruct((N_pad, V), jnp.float32),
            grid=(n_blocks,),
            in_specs=[tok_spec, table_spec],
            out_specs=logits_spec,
            compiler_params=pltpu.CompilerParams(
                dimension_semantics=("parallel",)),
        )(idx_col, table)
        logits = logits_pad if N_pad == N else logits_pad[:N]
        return logits.reshape(B, T, V), None

    tgt_flat = targets.reshape(N).astype(jnp.int32)
    if N_pad != N:
        tgt_flat = jnp.pad(tgt_flat, (0, N_pad - N))
    tgt_col = tgt_flat.reshape(N_pad, 1)

    logits_pad, per_row_loss = pl.pallas_call(
        functools.partial(_loss_kernel, N),
        out_shape=(
            jax.ShapeDtypeStruct((N_pad, V), jnp.float32),
            jax.ShapeDtypeStruct((N_pad, 1), jnp.float32),
        ),
        grid=(n_blocks,),
        in_specs=[tok_spec, tok_spec, table_spec],
        out_specs=(logits_spec, pl.BlockSpec((TM, 1), lambda i: (i, 0))),
        compiler_params=pltpu.CompilerParams(
            dimension_semantics=("parallel",)),
    )(idx_col, tgt_col, table)

    logits = logits_pad if N_pad == N else logits_pad[:N]
    loss = jnp.sum(per_row_loss) / jnp.float32(N)
    return logits, loss


if __name__ == "__main__":
    # Small, deterministic setup mirroring the module's __init__:
    # token_embedding_table = nn.Embedding(vocab_size, vocab_size)
    vocab_size = 65   # e.g. len(set(text)) for tiny-shakespeare
    B, T = 2, 8

    key = jax.random.PRNGKey(0)
    k_emb, k_idx, k_tgt = jax.random.split(key, 3)

    embedding_table = jax.random.normal(
        k_emb, (vocab_size, vocab_size), dtype=jnp.float32)
    idx = jax.random.randint(k_idx, (B, T), 0, vocab_size, dtype=jnp.int32)
    targets = jax.random.randint(k_tgt, (B, T), 0, vocab_size, dtype=jnp.int32)

    # With targets: logits (B*T, V), scalar loss.
    logits, loss = bigram_forward(idx, embedding_table, targets)
    jax.block_until_ready((logits, loss))

    # Without targets: logits (B, T, V), loss None.
    logits_nt, loss_nt = bigram_forward(idx, embedding_table, None)
    jax.block_until_ready(logits_nt)

    # Pure-JAX reference check (gather + cross entropy).
    ref_logits = embedding_table[idx.reshape(-1)]                       # (N, V)
    ref_lse = jax.nn.logsumexp(ref_logits, axis=-1)
    ref_tgt = jnp.take_along_axis(
        ref_logits, targets.reshape(-1, 1), axis=-1)[:, 0]
    ref_loss = jnp.mean(ref_lse - ref_tgt)

    assert logits.shape == (B * T, vocab_size)
    assert logits_nt.shape == (B, T, vocab_size)
    assert loss_nt is None
    assert jnp.allclose(logits, ref_logits, atol=1e-5, rtol=1e-5)
    assert jnp.allclose(logits_nt.reshape(-1, vocab_size), ref_logits,
                        atol=1e-5, rtol=1e-5)
    assert jnp.allclose(loss, ref_loss, atol=1e-5, rtol=1e-5)

    print("KERNEL_OK")
</pallas_src>

<mosaic_0001>
module attributes {stable_mosaic.version = 11 : i64} {
  func.func @_loss_kernel(%arg0: i32, %arg1: memref<16x1xi32, #tpu.memory_space<vmem>>, %arg2: memref<16x1xi32, #tpu.memory_space<vmem>>, %arg3: memref<65x65xf32, #tpu.memory_space<vmem>>, %arg4: memref<16x65xf32, #tpu.memory_space<vmem>>, %arg5: memref<16x1xf32, #tpu.memory_space<vmem>>) attributes {dimension_semantics = [#tpu.dimension_semantics<parallel>], iteration_bounds = array<i64: 1>, scalar_prefetch = 0 : i64, scratch_operands = 0 : i64, tpu.core_type = #tpu.core_type<tc>, window_params = [{transform_indices = @transform_0, window_bounds = array<i64: 16, 1>}, {transform_indices = @transform_1, window_bounds = array<i64: 16, 1>}, {pipeline_mode = #tpu.pipeline_mode<synchronous>, transform_indices = @transform_2, window_bounds = array<i64: 65, 65>}, {transform_indices = @transform_3, window_bounds = array<i64: 16, 65>}, {transform_indices = @transform_4, window_bounds = array<i64: 16, 1>}]} {
    %c0 = arith.constant 0 : index
    %c0_0 = arith.constant 0 : index
    %0 = vector.load %arg1[%c0, %c0_0] : memref<16x1xi32, #tpu.memory_space<vmem>>, vector<16x1xi32>
    %c0_1 = arith.constant 0 : index
    %c0_2 = arith.constant 0 : index
    %1 = vector.load %arg3[%c0_1, %c0_2] : memref<65x65xf32, #tpu.memory_space<vmem>>, vector<65x65xf32>
    %2 = tpu.iota {dimensions = array<i32: 1>} : vector<16x65xi32>
    %3 = vector.broadcast %0 : vector<16x1xi32> to vector<16x65xi32>
    %4 = arith.cmpi eq, %2, %3 : vector<16x65xi32>
    %5 = arith.extui %4 : vector<16x65xi1> to vector<16x65xi32>
    %6 = arith.sitofp %5 : vector<16x65xi32> to vector<16x65xf32>
    %cst = arith.constant dense<0.000000e+00> : vector<16x65xf32>
    %7 = tpu.matmul %6, %1, %cst {dimension_numbers = #tpu.dot_dimension_numbers<[1], [0], [0], [1], [0, 0, 1, 1], [], []>, precision = #tpu.contract_precision<fp32>} : vector<16x65xf32>, vector<65x65xf32>, vector<16x65xf32> -> vector<16x65xf32>
    %c0_3 = arith.constant 0 : index
    %c0_4 = arith.constant 0 : index
    %8 = vector.load %arg4[%c0_3, %c0_4] : memref<16x65xf32, #tpu.memory_space<vmem>>, vector<16x65xf32>
    tpu.vector_store %arg4[%c0_3, %c0_4], %7 {strides = array<i32>} : memref<16x65xf32, #tpu.memory_space<vmem>>, vector<16x65xf32>,
    %cst_5 = arith.constant dense<0xFF800000> : vector<16xf32>
    %9 = vector.multi_reduction <maximumf>, %7, %cst_5 [1] : vector<16x65xf32> to vector<16xf32>
    %10 = vector.shape_cast %9 : vector<16xf32> to vector<16x1xf32>
    %11 = vector.broadcast %10 : vector<16x1xf32> to vector<16x65xf32>
    %12 = arith.subf %7, %11 : vector<16x65xf32>
    %13 = math.exp %12 : vector<16x65xf32>
    %cst_6 = arith.constant dense<0.000000e+00> : vector<16xf32>
    %14 = vector.multi_reduction <add>, %13, %cst_6 [1] : vector<16x65xf32> to vector<16xf32>
    %15 = vector.shape_cast %14 : vector<16xf32> to vector<16x1xf32>
    %16 = math.log %15 : vector<16x1xf32>
    %17 = arith.addf %16, %10 : vector<16x1xf32>
    %18 = tpu.iota {dimensions = array<i32: 1>} : vector<16x65xi32>
    %c0_7 = arith.constant 0 : index
    %c0_8 = arith.constant 0 : index
    %19 = vector.load %arg2[%c0_7, %c0_8] : memref<16x1xi32, #tpu.memory_space<vmem>>, vector<16x1xi32>
    %20 = vector.broadcast %19 : vector<16x1xi32> to vector<16x65xi32>
    %21 = arith.cmpi eq, %18, %20 : vector<16x65xi32>
    %cst_9 = arith.constant 0.000000e+00 : f32
    %22 = vector.broadcast %cst_9 : f32 to vector<16x65xf32>
    %23 = arith.select %21, %7, %22 : vector<16x65xi1>, vector<16x65xf32>
    %cst_10 = arith.constant dense<0.000000e+00> : vector<16xf32>
    %24 = vector.multi_reduction <add>, %23, %cst_10 [1] : vector<16x65xf32> to vector<16xf32>
    %25 = vector.shape_cast %24 : vector<16xf32> to vector<16x1xf32>
    %c16_i32 = arith.constant 16 : i32
    %26 = arith.muli %arg0, %c16_i32 : i32
    %27 = tpu.iota {dimensions = array<i32: 0>} : vector<16x1xi32>
    %28 = vector.broadcast %26 : i32 to vector<16x1xi32>
    %29 = arith.addi %28, %27 : vector<16x1xi32>
    %c16_i32_11 = arith.constant 16 : i32
    %30 = vector.broadcast %c16_i32_11 : i32 to vector<16x1xi32>
    %31 = arith.cmpi slt, %29, %30 : vector<16x1xi32>
    %32 = arith.extui %31 : vector<16x1xi1> to vector<16x1xi32>
    %33 = arith.sitofp %32 : vector<16x1xi32> to vector<16x1xf32>
    %34 = arith.subf %17, %25 : vector<16x1xf32>
    %35 = arith.mulf %34, %33 : vector<16x1xf32>
    %c0_12 = arith.constant 0 : index
    %c0_13 = arith.constant 0 : index
    %36 = vector.load %arg5[%c0_12, %c0_13] : memref<16x1xf32, #tpu.memory_space<vmem>>, vector<16x1xf32>
    tpu.vector_store %arg5[%c0_12, %c0_13], %35 {strides = array<i32>} : memref<16x1xf32, #tpu.memory_space<vmem>>, vector<16x1xf32>,
    return
  }
  func.func @transform_0(%arg0: i32) -> (i32, i32) {
    %c0_i32 = arith.constant 0 : i32
    %c0_i32_0 = arith.constant 0 : i32
    return %arg0, %c0_i32 : i32, i32
  }
  func.func @transform_1(%arg0: i32) -> (i32, i32) {
    %c0_i32 = arith.constant 0 : i32
    %c0_i32_0 = arith.constant 0 : i32
    return %arg0, %c0_i32 : i32, i32
  }
  func.func @transform_2(%arg0: i32) -> (i32, i32) {
    %c0_i32 = arith.constant 0 : i32
    %c0_i32_0 = arith.constant 0 : i32
    %c0_i32_1 = arith.constant 0 : i32
    return %c0_i32, %c0_i32_0 : i32, i32
  }
  func.func @transform_3(%arg0: i32) -> (i32, i32) {
    %c0_i32 = arith.constant 0 : i32
    %c0_i32_0 = arith.constant 0 : i32
    return %arg0, %c0_i32 : i32, i32
  }
  func.func @transform_4(%arg0: i32) -> (i32, i32) {
    %c0_i32 = arith.constant 0 : i32
    %c0_i32_0 = arith.constant 0 : i32
    return %arg0, %c0_i32 : i32, i32
  }
}

</mosaic_0001>

<bundles_post_ra>
// kernel: tpu_custom_call.1
= control target key start
LH: loop header
LB: loop body
LE: loop exit
PB: predicated region body
PF: predicated region fallthrough
CT: control target
= control target key end

     0   :  { %10 = vsyncpa [#allocation3], 0  ;;  %s1287_s0 = inlined_call_operand.vmem [shape: s32[16,1], index: 0, kind: input, shape index: {}]   ;;  %s1288_s1 = inlined_call_operand.vmem [shape: s32[16,1], index: 1, kind: input, shape index: {}]   ;;  %s1289_s2 = inlined_call_operand.hbm [shape: f32[65,65], index: 2, kind: input, shape index: {}]   ;;  %s1290_s3 = inlined_call_operand.hbm [shape: f32[16,65], index: 3, kind: output, shape index: {0}]   ;;  %s1291_s4 = inlined_call_operand.vmem [shape: f32[16,1], index: 4, kind: output, shape index: {1}]  }
   0x1   :  { %11 = vsyncpa [#allocation4], 0  ;;  %s1115_s15 = smov [#allocation2]   ;;  %s1067_s19 = scalar_lea.hbm %s1289_s2, 1152 }
   0x2   :  { %s21_s16 = sshll.u32 %s1115_s15, 4  ;;  %p1068_p0 = scmp.ne.s32.totalorder %s1289_s2, %s1067_s19  ;;  %s22_s16 = int_to_ptr.vmem [resolvable:$true] %s21_s16 }
   0x3   :  { %p1071_p1 = scmp.lt.u32.totalorder %s1067_s19, %s1289_s2 }
   0x5   :  { %p1073_p2 = pnand %p1071_p1, %p1068_p0 }
   0x7   :  { %1076 = shalt.err (!%p1073_p2)
}
   0x8   :  { %s1077_s24 = scalar_lea.vmem %s22_s16, 1152  ;;  %p1082_p4 = scmp.lt.s32.totalorder %s22_s16, %s22_s16 }
   0x9   :  { %p1078_p3 = scmp.ne.s32.totalorder %s22_s16, %s1077_s24  ;;  %p1083_p5 = scmp.lt.s32.totalorder %s1077_s24, %s1077_s24 }
   0xb   :  { %p1084_p6 = por %p1083_p5, %p1082_p4 }
   0xd   :  { %p1085_p7 = pnand %p1084_p6, %p1078_p3 }
   0xf   :  { %1088 = shalt.err (!%p1085_p7)
}
  0x10   :  { %s1116_s25 = smov 128   ;;  %s1117_s26 = smov 8  }
  0x11   :  { %27 = dma.hbm_to_vmem [thread:$0]  %s1289_s2, 1152, %s22_s16, [#allocation3], %s1116_s25, %s1116_s25, %s1117_s26  }
  0x12   :  { %1111 = dma.done.wait [#allocation3], 1152  }
  0x13   :  { %1112 = vsyncadd [#allocation3], 4294966144  ;;  %v1118_v0 = vmov 0   ;;  %v31_v1 = vld [vmem:[%s1287_s0] sm:$0xff]  ;;  %v32_v2 = vld [vmem:[%s1287_s0 + $0x8] sm:$0xff]  ;;  %vm63_vm0 = vcmask 1040384  }
  0x14   :  { %1057 = vset.pattern.permute.xlu0 %v1118_v0  ;;  %1058 = vset.pattern.permute.xlu1 %v1118_v0  ;;  %v33_v3 = vld [vmem:[#allocation2] sm:$0xff]  ;;  %v34_v4 = vld [vmem:[#allocation2 + $0x8] sm:$0xff]  ;;  %v35_v5 = vld [vmem:[#allocation2 + $0x10] sm:$0xff]  ;;  %vm56_vm1 = vcmask 531456  }
  0x15   :  { %45 = vperm.xlu0 %1057, %v31_v1   ;;  %v68_v6 = vand.u32 4294901760, %v33_v3  ;;  %v71_v7 = vand.u32 4294901760, %v34_v4  ;;  %v36_v8 = vld [vmem:[#allocation2 + $0x18] sm:$0xff]  ;;  %v74_v9 = vand.u32 4294901760, %v35_v5  ;;  %v37_v10 = vld [vmem:[#allocation2 + $0x20] sm:$0xff]  ;;  %v38_v11 = vld [vmem:[#allocation2 + $0x28] sm:$0xff] }
  0x16   :  { %v77_v12 = vand.u32 4294901760, %v36_v8  ;;  %v80_v14 = vand.u32 4294901760, %v37_v10  ;;  %v83_v15 = vand.u32 4294901760, %v38_v11  ;;  %v39_v17 = vld [vmem:[#allocation2 + $0x30] sm:$0xff]  ;;  %v40_v18 = vld [vmem:[#allocation2 + $0x38] sm:$0xff]  ;;  %v686_v20 = vld [vmem:[%s1288_s1] sm:$0xff] }
  0x17   :  { %v1167_v13 = vpack.c.bf16 %v71_v7, %v68_v6  ;;  %v1171_v19 = vsub.f32 %v33_v3, %v68_v6  ;;  %v1178_v21 = vsub.f32 %v34_v4, %v71_v7  ;;  %v86_v24 = vand.u32 4294901760, %v39_v17  ;;  %v41_v27 = vld [vmem:[#allocation2 + $0x40] sm:$0x1] }
  0x18   :  { %v1169_v16 = vpack.c.bf16 %v77_v12, %v74_v9  ;;  %v1185_v23 = vpack.c.bf16 %v83_v15, %v80_v14  ;;  %v89_v25 = vand.u32 4294901760, %v40_v18  ;;  %v177_v28 = vsub.f32 %v35_v5, %v74_v9 }
  0x19   :  { %48 = vperm.xlu0 %1057, %v32_v2   ;;  %994 = vmatprep.subr.bf16.mxu0 %v1167_v13  ;;  %v164_v22 = vand.u32 4294901760, %v1171_v19  ;;  %v171_v26 = vand.u32 4294901760, %v1178_v21  ;;  %v184_v30 = vsub.f32 %v36_v8, %v77_v12  ;;  %v1195_v32 = vsel %vm63_vm0, %v41_v27, 0 }
  0x1a   :  { %946 = vmatprep.subr.bf16.mxu1 %v1167_v13  ;;  %996 = vmatpush3.bf16.msra.mxu0 %v1167_v13  ;;  %v1193_v31 = vpack.c.bf16 %v89_v25, %v86_v24  ;;  %v178_v34 = vand.u32 4294901760, %v177_v28  ;;  %v191_v37 = vsub.f32 %v37_v10, %v80_v14  ;;  %v198_v38 = vsub.f32 %v38_v11, %v83_v15 }
  0x1b   :  { %948 = vmatpush3.bf16.msra.mxu1 %v1167_v13  ;;  %998 = vmatprep.subr.bf16.mxu0 %v1169_v16  ;;  %v165_v29 = vsub.f32 %v1171_v19, %v164_v22  ;;  %v172_v33 = vsub.f32 %v1178_v21, %v171_v26  ;;  %v185_v35 = vand.u32 4294901760, %v184_v30  ;;  %v1201_v39 = vand.u32 4294901760, %v1195_v32 }
  0x1c   :  { %950 = vmatprep.subr.bf16.mxu1 %v1169_v16  ;;  %v179_v36 = vsub.f32 %v177_v28, %v178_v34  ;;  %v192_v45 = vand.u32 4294901760, %v191_v37  ;;  %v199_v46 = vand.u32 4294901760, %v198_v38  ;;  %v205_v51 = vsub.f32 %v39_v17, %v86_v24 }
  0x1d   :  { %689 = vperm.xlu0 %1057, %v686_v20   ;;  %v166_v40 = vand.u32 4294901760, %v165_v29  ;;  %v1203_v41 = vpack.c.bf16 %v185_v35, %v178_v34  ;;  %v186_v42 = vsub.f32 %v184_v30, %v185_v35  ;;  %v173_v43 = vand.u32 4294901760, %v172_v33 }
  0x1e   :  { %1000 = vmatpush3.bf16.msra.mxu0 %v1169_v16  ;;  %v180_v44 = vand.u32 4294901760, %v179_v36  ;;  %v1207_v48 = vpack.c.bf16 %v199_v46, %v192_v45  ;;  %v193_v49 = vsub.f32 %v191_v37, %v192_v45  ;;  %v200_v50 = vsub.f32 %v198_v38, %v199_v46  ;;  %v687_v36 = vld [vmem:[%s1288_s1 + $0x8] sm:$0xff]  ;;  %s1120_s1 = smov [#allocation5]  }
  0x1f   :  { %952 = vmatpush3.bf16.msra.mxu1 %v1169_v16  ;;  %1002 = vmatprep.subr.bf16.mxu0 %v1185_v23  ;;  %v187_v47 = vand.u32 4294901760, %v186_v42  ;;  %v1009_v52 = vpack.c.bf16 %v171_v26, %v164_v22  ;;  %v212_v54 = vsub.f32 %v40_v18, %v89_v25  ;;  %v961_v55 = vpack.c.bf16 %v173_v43, %v166_v40  ;;  %s729_s9 = sshll.u32 %s1120_s1, 4  ;;  %s730_s9 = int_to_ptr.vmem [resolvable:$true] %s729_s9 }
  0x20   :  { %954 = vmatprep.subr.bf16.mxu1 %v1185_v23  ;;  %v194_v56 = vand.u32 4294901760, %v193_v49  ;;  %v201_v57 = vand.u32 4294901760, %v200_v50  ;;  %v206_v58 = vand.u32 4294901760, %v205_v51  ;;  %v977_v3 = vpack.c.bf16 %v1178_v21, %v1171_v19  ;;  %s1089_s10 = scalar_lea.vmem %s730_s9, 256  ;;  %p1094_p9 = scmp.lt.s32.totalorder %s730_s9, %s730_s9 }
  0x21   :  { %v965_v53 = vpack.c.bf16 %v187_v47, %v180_v44  ;;  %v213_v59 = vand.u32 4294901760, %v212_v54  ;;  %v981_v4 = vpack.c.bf16 %v184_v30, %v177_v28  ;;  %v1217_v5 = vpack.c.bf16 %v198_v38, %v191_v37  ;;  %p1090_p8 = scmp.ne.s32.totalorder %s730_s9, %s1089_s10  ;;  %p1095_p10 = scmp.lt.s32.totalorder %s1089_s10, %s1089_s10 }
  0x22   :  { %1004 = vmatpush3.bf16.msra.mxu0 %v1185_v23  ;;  %v969_v60 = vpack.c.bf16 %v201_v57, %v194_v56  ;;  %v207_v61 = vsub.f32 %v205_v51, %v206_v58  ;;  %v1219_v6 = vpack.c.bf16 %v212_v54, %v205_v51  ;;  %v42_v7 = vlaneseq }
  0x23   :  { %956 = vmatpush3.bf16.msra.mxu1 %v1185_v23  ;;  %1006 = vmatprep.subr.bf16.mxu0 %v1193_v31  ;;  %v1021_v62 = vpack.c.bf16 %v213_v59, %v206_v58  ;;  %v214_v63 = vsub.f32 %v212_v54, %v213_v59  ;;  %v1119_v10 = vmov 0.0   ;;  %v219_v27 = vsub.f32 %v1195_v32, %v1201_v39  ;;  %p1096_p11 = por %p1095_p10, %p1094_p9 }
  0x24   :  { %958 = vmatprep.subr.bf16.mxu1 %v1193_v31  ;;  %v208_v0 = vand.u32 4294901760, %v207_v61  ;;  %v1221_v8 = vand.u32 127, %v42_v7 }
  0x25   :  { %v215_v1 = vand.u32 4294901760, %v214_v63  ;;  %v220_v28 = vand.u32 4294901760, %v219_v27  ;;  %p1097_p12 = pnand %p1096_p11, %p1090_p8 }
  0x26   :  { %1008 = vmatpush3.bf16.msra.mxu0 %v1193_v31 }
  0x27   :  { %960 = vmatpush3.bf16.msra.mxu1 %v1193_v31  ;;  %898 = vmatprep.subr.mxu0 %v1201_v39  ;;  %v973_v2 = vpack.c.bf16 %v215_v1, %v208_v0  ;;  %v221_v29 = vsub.f32 %v219_v27, %v220_v28 }
  0x28   :  { %835 = vmatprep.subr.mxu1 %v1201_v39 }
  0x29   :  { %v222_v30 = vand.u32 4294901760, %v221_v29 }
  0x2a   :  { %899 = vmatpush3.msra.mxu0 %v1201_v39 }
  0x2b   :  { %836 = vmatpush3.msra.mxu1 %v1201_v39  ;;  %1010 = vmatprep.subr.bf16.mxu0 %v1009_v52 }
  0x2c   :  { %962 = vmatprep.subr.bf16.mxu1 %v961_v55 }
  0x94   :  { %v46_v9 = vpop.permute.xlu0 %45 }
  0x95   :  { %vm50_vm2 = vcmp.eq.s32.totalorder %v1221_v8, %v46_v9 }
  0x96   :  { %v745_v11 = vsel %vm50_vm2, 1.0, %v1119_v10 }
  0x97   :  { %v58_v12 = vsel %vm56_vm1, %v745_v11, 0 }
  0x98   :  { %v142_v14 = vsub.f32 %v58_v12, %v58_v12  ;;  %v49_v15 = vpop.permute.xlu0 %48 }
  0x99   :  { %vm51_vm3 = vcmp.eq.s32.totalorder %v1221_v8, %v49_v15 }
  0x9a   :  { %v746_v17 = vsel %vm51_vm3, 1.0, %v1119_v10  ;;  %v143_v18 = vand.u32 4294901760, %v142_v14 }
  0x9b   :  { %v61_v19 = vsel %vm56_vm1, %v746_v17, 0 }
  0x9c   :  { %v152_v20 = vsub.f32 %v61_v19, %v61_v19  ;;  %900 = vmatprep.mubr.f32.mxu0 %v143_v18  ;;  %v144_v21 = vsub.f32 %v142_v14, %v143_v18  ;;  %v690_v45 = vpop.permute.xlu0 %689 }
  0x9d   :  { %vm694_vm4 = vcmp.eq.s32.totalorder %v1221_v8, %v690_v45 }
  0x9e   :  { %v145_v22 = vand.u32 4294901760, %v144_v21  ;;  %v153_v24 = vand.u32 4294901760, %v152_v20 }
  0xa0   :  { %837 = vmatprep.mubr.f32.mxu1 %v145_v22  ;;  %901 = vmatmul.mubr.f32.vlgmr.msra.gmra.mrb[0].mxu0 %v153_v24  ;;  %v154_v25 = vsub.f32 %v152_v20, %v153_v24 }
  0xa1   :  { %1012 = vmatpush3.bf16.msra.mxu0 %v1009_v52  ;;  %921 = vmatprep.mubr.msk.f32.mxu0 %vm56_vm1, %v745_v11 }
  0xa2   :  { %1014 = vmatprep.subr.bf16.mxu0 %v1203_v41  ;;  %v155_v26 = vand.u32 4294901760, %v154_v25 }
  0xa4   :  { %838 = vmatmul.mubr.f32.vlgmr.msra.gmra.mrb[0].mxu1 %v155_v26 }
  0xa5   :  { %964 = vmatpush3.bf16.msra.mxu1 %v961_v55  ;;  %1016 = vmatpush3.bf16.msra.mxu0 %v1203_v41 }
  0xa6   :  { %858 = vmatprep.mubr.msk.f32.mxu1 %vm56_vm1, %v745_v11  ;;  %966 = vmatprep.subr.bf16.mxu1 %v965_v53 }
  0xa7   :  { %1018 = vmatprep.subr.bf16.mxu0 %v1207_v48 }
  0xa9   :  { %968 = vmatpush3.bf16.msra.mxu1 %v965_v53  ;;  %1020 = vmatpush3.bf16.msra.mxu0 %v1207_v48 }
  0xaa   :  { %970 = vmatprep.subr.bf16.mxu1 %v969_v60  ;;  %1022 = vmatprep.subr.bf16.mxu0 %v1021_v62 }
  0xad   :  { %972 = vmatpush3.bf16.msra.mxu1 %v969_v60  ;;  %1024 = vmatpush3.bf16.msra.mxu0 %v1021_v62 }
  0xae   :  { %974 = vmatprep.subr.bf16.mxu1 %v973_v2  ;;  %919 = vmatprep.subr.mxu0 %v220_v28 }
  0xb1   :  { %976 = vmatpush3.bf16.msra.mxu1 %v973_v2  ;;  %920 = vmatpush3.msra.mxu0 %v220_v28 }
  0xb2   :  { %922 = vmatmul.mubr.msk.f32.vlgmr.msra.gmra.mrb[0].mxu0 %vm56_vm1, %v746_v17  ;;  %1026 = vmatprep.subr.bf16.mxu0 %v1167_v13 }
  0xb3   :  { %1028 = vmatpush3.bf16.msra.mxu0 %v1167_v13  ;;  %942 = vmatprep.mubr.msk.f32.mxu0 %vm56_vm1, %v745_v11 }
  0xb4   :  { %856 = vmatprep.subr.mxu1 %v222_v30  ;;  %1030 = vmatprep.subr.bf16.mxu0 %v1169_v16 }
  0xb5   :  { %857 = vmatpush3.msra.mxu1 %v222_v30 }
  0xb6   :  { %859 = vmatmul.mubr.msk.f32.vlgmr.msra.gmra.mrb[0].mxu1 %vm56_vm1, %v746_v17  ;;  %978 = vmatprep.subr.bf16.mxu1 %v977_v3 }
  0xb7   :  { %980 = vmatpush3.bf16.msra.mxu1 %v977_v3  ;;  %879 = vmatprep.mubr.f32.mxu1 %v142_v14 }
  0xb8   :  { %1032 = vmatpush3.bf16.msra.mxu0 %v1169_v16  ;;  %982 = vmatprep.subr.bf16.mxu1 %v981_v4 }
  0xb9   :  { %1034 = vmatprep.subr.bf16.mxu0 %v1185_v23 }
  0xbb   :  { %984 = vmatpush3.bf16.msra.mxu1 %v981_v4 }
  0xbc   :  { %1036 = vmatpush3.bf16.msra.mxu0 %v1185_v23  ;;  %986 = vmatprep.subr.bf16.mxu1 %v1217_v5 }
  0xbd   :  { %1038 = vmatprep.subr.bf16.mxu0 %v1193_v31 }
  0xbf   :  { %988 = vmatpush3.bf16.msra.mxu1 %v1217_v5 }
  0xc0   :  { %1040 = vmatpush3.bf16.msra.mxu0 %v1193_v31  ;;  %990 = vmatprep.subr.bf16.mxu1 %v1219_v6 }
  0xc1   :  { %940 = vmatprep.subr.mxu0 %v1201_v39 }
  0xc3   :  { %992 = vmatpush3.bf16.msra.mxu1 %v1219_v6 }
  0xc4   :  { %941 = vmatpush3.msra.mxu0 %v1201_v39  ;;  %877 = vmatprep.subr.mxu1 %v219_v27 }
  0xc5   :  { %943 = vmatmul.mubr.msk.f32.vlgmr.msra.gmra.mrb[0].mxu0 %vm56_vm1, %v746_v17 }
  0xc7   :  { %878 = vmatpush3.msra.mxu1 %v219_v27 }
  0xc8   :  { %880 = vmatmul.mubr.f32.vlgmr.msra.gmra.mrb[0].mxu1 %v152_v20 }
 0x198   :  { %v944_v13 = vpop.f32.mrb[0].mxu0 }
 0x199   :  { %v650_v16 = vpop.f32.mrb[1].mxu0 }
 0x19b   :  { %v881_v23 = vpop.f32.mrb[0].mxu1 }
 0x19c   :  { %v1041_v32 = vadd.f32 %v944_v13, %v881_v23  ;;  %v369_v33 = vpop.f32.mrb[1].mxu1 }
 0x19d   :  { %v1042_v34 = vadd.f32 %v650_v16, %v369_v33 }
 0x19e   :  { %661 = vst.msk [vmem:[#allocation5 + $0x8] sm:$0xff] %vm56_vm1, %v1041_v32  ;;  %v665_v31 = vsel %vm56_vm1, %v1041_v32, -inf }
 0x19f   :  { %660 = vst.msk [vmem:[#allocation5] sm:$0xff] %vm56_vm1, %v1042_v34  ;;  %666 = vmax.xlane.f32.xlu1 %v665_v31  ;;  %v662_v35 = vsel %vm56_vm1, %v1042_v34, -inf  ;;  %v696_v49 = vsel %vm694_vm4, %v1042_v34, 0.0 }
 0x1a0   :  { %v698_v50 = vsel %vm56_vm1, %v696_v49, 0.0 }
 0x1a3   :  { %663 = vmax.xlane.f32.xlu1 %v662_v35 }
 0x1b4   :  { %692 = vperm.xlu1 %1058, %v687_v36  }
 0x22c   :  { %v667_v37 = vpop.xlane.xlu1 %666 }
 0x22d   :  { %v669_v38 = vsub.f32 %v1041_v32, %v667_v37 }
 0x22f   :  { %v672_v39 = vmul.f32 1.442695, %v669_v38 }
 0x230   :  { %v664_v40 = vpop.xlane.xlu1 %663 }
 0x231   :  { %1059 = vpow2.f32 %v672_v39  ;;  %v668_v41 = vsub.f32 %v1042_v34, %v664_v40 }
 0x233   :  { %v670_v42 = vmul.f32 1.442695, %v668_v41 }
 0x234   :  { %v693_v47 = vpop.permute.xlu1 %692 }
 0x235   :  { %1061 = vpow2.f32 %v670_v42  ;;  %vm695_vm5 = vcmp.eq.s32.totalorder %v1221_v8, %v693_v47 }
 0x236   :  { %v697_v51 = vsel %vm695_vm5, %v1041_v32, 0.0 }
 0x237   :  { %v701_v52 = vsel %vm56_vm1, %v697_v51, 0.0 }
 0x23b   :  { %v1060_v43 = vpop.eup %1059 }
 0x23c   :  { %v677_v44 = vsel %vm56_vm1, %v1060_v43, 0.0 }
 0x23d   :  { %678 = vadd.xlane.f32.xlu1 %v677_v44 }
 0x23f   :  { %v1062_v46 = vpop.eup %1061 }
 0x240   :  { %v674_v48 = vsel %vm56_vm1, %v1062_v46, 0.0 }
 0x241   :  { %675 = vadd.xlane.f32.xlu0 %v674_v48 }
 0x245   :  { %699 = vadd.xlane.f32.xlu0 %v698_v50 }
 0x249   :  { %702 = vadd.xlane.f32.xlu0 %v701_v52 }
 0x24a   :  { %1100 = shalt.err (!%p1097_p12)
}
 0x24b   :  { %s1101_s13 = scalar_lea.hbm %s1290_s3, 256 }
 0x24c   :  { %p1102_p13 = scmp.ne.s32.totalorder %s1290_s3, %s1101_s13  ;;  %p1105_p0 = scmp.lt.u32.totalorder %s1101_s13, %s1290_s3 }
 0x24e   :  { %p1107_p1 = pnand %p1105_p0, %p1102_p13 }
 0x250   :  { %1110 = shalt.err (!%p1107_p1)
}
 0x251   :  { %735 = dma.vmem_to_hbm [thread:$0]  %s730_s9, 256, %s1290_s3, [#allocation4], %s1116_s25, %s1116_s25, %s1117_s26   ;;  %vm721_vm6 = vcmask 7168  }
 0x2ca   :  { %v679_v53 = vpop.xlane.xlu1 %678 }
 0x2cb   :  { %1063 = vlog2.f32 %v679_v53 }
 0x2ce   :  { %v676_v54 = vpop.xlane.xlu0 %675 }
 0x2cf   :  { %1065 = vlog2.f32 %v676_v54 }
 0x2d2   :  { %v700_v55 = vpop.xlane.xlu0 %699 }
 0x2d5   :  { %v1064_v56 = vpop.eup %1063 }
 0x2d6   :  { %v683_v57 = vmul.f32 0.6931472, %v1064_v56  ;;  %v703_v60 = vpop.xlane.xlu0 %702 }
 0x2d8   :  { %v685_v58 = vadd.f32 %v683_v57, %v667_v37 }
 0x2d9   :  { %v1066_v59 = vpop.eup %1065 }
 0x2da   :  { %v681_v61 = vmul.f32 0.6931472, %v1066_v59  ;;  %v718_v62 = vsub.f32 %v685_v58, %v703_v60 }
 0x2dc   :  { %v684_v63 = vadd.f32 %v681_v61, %v664_v40  ;;  %723 = vst.msk [vmem:[%s1291_s4 + $0x8] sm:$0xff] %vm721_vm6, %v718_v62 }
 0x2de   :  { %v717_v0 = vsub.f32 %v684_v63, %v700_v55 }
 0x2e0   :  { %722 = vst.msk [vmem:[%s1291_s4] sm:$0xff] %vm721_vm6, %v717_v0 }
 0x2e1   :  { %1113 = dma.done.wait [#allocation4], 256  }
 0x2e2   :  { %1114 = vsyncadd [#allocation4], 4294967040 }
 0x2e3   :  { %743 = vsyncpa [#allocation3], 1 }
 0x2e4   :  { %744 = vsyncpa [#allocation4], 1 }

</bundles_post_ra>
